<compile_context>
chip_gen: v7x
topology: tpu7x:2x2x1
jax: 0.10.0
libtpu: 0.0.40
codegen_flags: <defaults>
</compile_context>

<pallas_src>
import functools

import jax
import jax.numpy as jnp
import numpy as np
from jax import lax
from jax.experimental import pallas as pl
from jax.experimental.pallas import tpu as pltpu


def _atrous_kernel(x_ref, w_ref, gamma_ref, beta_ref, mask_ref, o_ref, col_ref,
                   *, N, Cinp, L, Wpad, rate, eps, inv_count):
    # ---- im2col: channel-major, lane-dense, 128-aligned row-block writes ----
    for n in range(N):                                   # N is tiny and static
        xrow = x_ref[n]                                  # (Cinp, XLEN) loaded once per image
        for kh in range(3):
            for kw in range(3):
                tap = kh * 3 + kw
                off = (kh * Wpad + kw) * rate            # constant flat shift in padded grid
                col_ref[tap * Cinp:(tap + 1) * Cinp,
                        n * L:(n + 1) * L] = xrow[:, off:off + L]

    # ---- single fused MXU dot over all taps and the whole batch ----
    # (Cout, 9*Cinp) @ (9*Cinp, N*L) -> (Cout, N*L): lane-dense conv result in vregs.
    y = jnp.dot(w_ref[...], col_ref[...], preferred_element_type=jnp.float32)
    # NOTE: conv bias intentionally omitted — it cancels exactly under
    # training-mode BatchNorm (y - mean(y) is invariant to a per-channel shift).

    # ---- BatchNorm2d (training-mode batch stats over valid pixels) + ReLU ----
    m = mask_ref[...]                                    # (1, N*L): 1.0 valid / 0.0 padded-grid garbage
    mean = jnp.sum(y * m, axis=1, keepdims=True) * inv_count          # (Cout, 1)
    d = (y - mean) * m
    var = jnp.sum(d * d, axis=1, keepdims=True) * inv_count
    scale = gamma_ref[...] * lax.rsqrt(var + eps)        # rsqrt -> EUP slot
    shift = beta_ref[...] - mean * scale
    act = jnp.maximum(y * scale + shift, 0.0)            # (Cout, N*L), f32 epilogue

    # one aligned, full-lane store per image (L is a multiple of 128)
    for n in range(N):
        o_ref[n] = act[:, n * L:(n + 1) * L]


def atrous_module(x_nchw, w_oihw, conv_bias, gamma, beta, *, rate, eps=1e-5):
    """Pallas implementation of Atrous_module.forward (NCHW in / NCHW out)."""
    del conv_bias  # exactly cancelled by training-mode BatchNorm (see kernel note)
    N, Cin, H, W = x_nchw.shape
    Cout = w_oihw.shape[0]
    Cinp = ((Cin + 7) // 8) * 8                  # pad channels to f32 sublane multiple
    Hpad, Wpad = H + 2 * rate, W + 2 * rate
    L = ((H * Wpad + 127) // 128) * 128          # per-image flattened output slab (lane-aligned)
    max_off = 2 * rate * (Wpad + 1)              # largest tap shift
    XLEN = ((max(Hpad * Wpad, max_off + L) + 127) // 128) * 128

    # ---- glue: zero padding + flatten padded spatial onto lanes (NO transpose) ----
    x_p = jnp.pad(x_nchw.astype(jnp.float32),
                  ((0, 0), (0, Cinp - Cin), (rate, rate), (rate, rate)))
    x_flat = jnp.pad(x_p.reshape(N, Cinp, Hpad * Wpad),
                     ((0, 0), (0, 0), (0, XLEN - Hpad * Wpad)))      # (N, Cinp, XLEN)

    # weights: (Cout, Cin, 3, 3) -> (Cout, kh, kw, Cin_pad) -> (Cout, 9*Cinp)
    w_t = jnp.transpose(w_oihw.astype(jnp.float32), (0, 2, 3, 1))
    w_t = jnp.pad(w_t, ((0, 0), (0, 0), (0, 0), (0, Cinp - Cin)))
    w2t = w_t.reshape(Cout, 9 * Cinp)

    g = gamma.reshape(Cout, 1).astype(jnp.float32)
    b = beta.reshape(Cout, 1).astype(jnp.float32)

    # valid-pixel mask over the per-image padded slab (excludes padded-grid
    # columns/rows and the lane-alignment tail from the BN statistics)
    p = np.arange(L)
    valid = ((p < H * Wpad) & ((p % Wpad) < W)).astype(np.float32)
    mask = jnp.asarray(np.tile(valid, N)[None, :])                   # (1, N*L)

    kernel = functools.partial(
        _atrous_kernel, N=N, Cinp=Cinp, L=L, Wpad=Wpad, rate=rate, eps=eps,
        inv_count=1.0 / float(N * H * W))

    out = pl.pallas_call(
        kernel,
        out_shape=jax.ShapeDtypeStruct((N, Cout, L), jnp.float32),
        # No grid: single invocation, everything resident in VMEM at these sizes
        # (no double-buffering waste, nothing to pipeline).
        in_specs=[
            pl.BlockSpec(memory_space=pltpu.MemorySpace.VMEM),   # x_flat
            pl.BlockSpec(memory_space=pltpu.MemorySpace.VMEM),   # w2t
            pl.BlockSpec(memory_space=pltpu.MemorySpace.VMEM),   # gamma
            pl.BlockSpec(memory_space=pltpu.MemorySpace.VMEM),   # beta
            pl.BlockSpec(memory_space=pltpu.MemorySpace.VMEM),   # mask
        ],
        out_specs=pl.BlockSpec(memory_space=pltpu.MemorySpace.VMEM),
        scratch_shapes=[
            pltpu.VMEM((9 * Cinp, N * L), jnp.float32),          # channel-major im2col buffer
        ],
    )(x_flat, w2t, g, b, mask)

    # crop the padded-grid garbage columns/rows: (N, Cout, L) -> (N, Cout, H, W)
    return out[:, :, :H * Wpad].reshape(N, Cout, H, Wpad)[:, :, :, :W]


def _reference(x, w, cb, gamma, beta, *, rate, eps=1e-5):
    """Pure-JAX reference mirroring the PyTorch forward (NCHW)."""
    y = lax.conv_general_dilated(
        x, w, window_strides=(1, 1),
        padding=((rate, rate), (rate, rate)),
        rhs_dilation=(rate, rate),
        dimension_numbers=("NCHW", "OIHW", "NCHW"))
    y = y + cb[None, :, None, None]
    mean = jnp.mean(y, axis=(0, 2, 3), keepdims=True)
    var = jnp.mean((y - mean) ** 2, axis=(0, 2, 3), keepdims=True)
    y = (y - mean) / jnp.sqrt(var + eps)
    y = y * gamma[None, :, None, None] + beta[None, :, None, None]
    return jnp.maximum(y, 0.0)


if __name__ == "__main__":
    # small shapes consistent with the module: inplanes=4, planes=8, rate=2
    N, Cin, H, W = 2, 4, 16, 16
    Cout, rate = 8, 2

    key = jax.random.PRNGKey(0)
    k_x, k_w, k_b, k_g, k_be = jax.random.split(key, 5)

    x = jax.random.normal(k_x, (N, Cin, H, W), dtype=jnp.float32)
    w = jax.random.normal(k_w, (Cout, Cin, 3, 3), dtype=jnp.float32) * 0.1
    conv_bias = jax.random.normal(k_b, (Cout,), dtype=jnp.float32) * 0.1
    gamma = 1.0 + 0.1 * jax.random.normal(k_g, (Cout,), dtype=jnp.float32)
    beta = 0.1 * jax.random.normal(k_be, (Cout,), dtype=jnp.float32)

    out = atrous_module(x, w, conv_bias, gamma, beta, rate=rate)
    out = jax.block_until_ready(out)

    ref = _reference(x, w, conv_bias, gamma, beta, rate=rate)
    assert out.shape == (N, Cout, H, W)
    assert np.allclose(np.asarray(out), np.asarray(ref), rtol=1e-4, atol=1e-4)

    print("KERNEL_OK")
</pallas_src>

<mosaic_0001>
module attributes {stable_mosaic.version = 11 : i64} {
  func.func @_atrous_kernel(%arg0: memref<2x8x512xf32, #tpu.memory_space<vmem>>, %arg1: memref<8x72xf32, #tpu.memory_space<vmem>>, %arg2: memref<8x1xf32, #tpu.memory_space<vmem>>, %arg3: memref<8x1xf32, #tpu.memory_space<vmem>>, %arg4: memref<1x768xf32, #tpu.memory_space<vmem>>, %arg5: memref<2x8x384xf32, #tpu.memory_space<vmem>>, %arg6: memref<72x768xf32, #tpu.memory_space<vmem>>) attributes {dimension_semantics = [], scalar_prefetch = 0 : i64, scratch_operands = 1 : i64, tpu.core_type = #tpu.core_type<tc>} {
    %c0 = arith.constant 0 : index
    %c0_0 = arith.constant 0 : index
    %c0_1 = arith.constant 0 : index
    %0 = vector.load %arg0[%c0, %c0_0, %c0_1] : memref<2x8x512xf32, #tpu.memory_space<vmem>>, vector<1x8x512xf32>
    %1 = vector.shape_cast %0 : vector<1x8x512xf32> to vector<8x512xf32>
    %2 = vector.extract_strided_slice %1 {offsets = [0, 0], sizes = [8, 384], strides = [1, 1]} : vector<8x512xf32> to vector<8x384xf32>
    %c0_2 = arith.constant 0 : index
    %c0_3 = arith.constant 0 : index
    %3 = vector.load %arg6[%c0_2, %c0_3] : memref<72x768xf32, #tpu.memory_space<vmem>>, vector<8x384xf32>
    tpu.vector_store %arg6[%c0_2, %c0_3], %2 {strides = array<i32>} : memref<72x768xf32, #tpu.memory_space<vmem>>, vector<8x384xf32>,
    %4 = vector.extract_strided_slice %1 {offsets = [0, 2], sizes = [8, 384], strides = [1, 1]} : vector<8x512xf32> to vector<8x384xf32>
    %c8 = arith.constant 8 : index
    %c0_4 = arith.constant 0 : index
    %5 = vector.load %arg6[%c8, %c0_4] : memref<72x768xf32, #tpu.memory_space<vmem>>, vector<8x384xf32>
    tpu.vector_store %arg6[%c8, %c0_4], %4 {strides = array<i32>} : memref<72x768xf32, #tpu.memory_space<vmem>>, vector<8x384xf32>,
    %6 = vector.extract_strided_slice %1 {offsets = [0, 4], sizes = [8, 384], strides = [1, 1]} : vector<8x512xf32> to vector<8x384xf32>
    %c16 = arith.constant 16 : index
    %c0_5 = arith.constant 0 : index
    %7 = vector.load %arg6[%c16, %c0_5] : memref<72x768xf32, #tpu.memory_space<vmem>>, vector<8x384xf32>
    tpu.vector_store %arg6[%c16, %c0_5], %6 {strides = array<i32>} : memref<72x768xf32, #tpu.memory_space<vmem>>, vector<8x384xf32>,
    %8 = vector.extract_strided_slice %1 {offsets = [0, 40], sizes = [8, 384], strides = [1, 1]} : vector<8x512xf32> to vector<8x384xf32>
    %c24 = arith.constant 24 : index
    %c0_6 = arith.constant 0 : index
    %9 = vector.load %arg6[%c24, %c0_6] : memref<72x768xf32, #tpu.memory_space<vmem>>, vector<8x384xf32>
    tpu.vector_store %arg6[%c24, %c0_6], %8 {strides = array<i32>} : memref<72x768xf32, #tpu.memory_space<vmem>>, vector<8x384xf32>,
    %10 = vector.extract_strided_slice %1 {offsets = [0, 42], sizes = [8, 384], strides = [1, 1]} : vector<8x512xf32> to vector<8x384xf32>
    %c32 = arith.constant 32 : index
    %c0_7 = arith.constant 0 : index
    %11 = vector.load %arg6[%c32, %c0_7] : memref<72x768xf32, #tpu.memory_space<vmem>>, vector<8x384xf32>
    tpu.vector_store %arg6[%c32, %c0_7], %10 {strides = array<i32>} : memref<72x768xf32, #tpu.memory_space<vmem>>, vector<8x384xf32>,
    %12 = vector.extract_strided_slice %1 {offsets = [0, 44], sizes = [8, 384], strides = [1, 1]} : vector<8x512xf32> to vector<8x384xf32>
    %c40 = arith.constant 40 : index
    %c0_8 = arith.constant 0 : index
    %13 = vector.load %arg6[%c40, %c0_8] : memref<72x768xf32, #tpu.memory_space<vmem>>, vector<8x384xf32>
    tpu.vector_store %arg6[%c40, %c0_8], %12 {strides = array<i32>} : memref<72x768xf32, #tpu.memory_space<vmem>>, vector<8x384xf32>,
    %14 = vector.extract_strided_slice %1 {offsets = [0, 80], sizes = [8, 384], strides = [1, 1]} : vector<8x512xf32> to vector<8x384xf32>
    %c48 = arith.constant 48 : index
    %c0_9 = arith.constant 0 : index
    %15 = vector.load %arg6[%c48, %c0_9] : memref<72x768xf32, #tpu.memory_space<vmem>>, vector<8x384xf32>
    tpu.vector_store %arg6[%c48, %c0_9], %14 {strides = array<i32>} : memref<72x768xf32, #tpu.memory_space<vmem>>, vector<8x384xf32>,
    %16 = vector.extract_strided_slice %1 {offsets = [0, 82], sizes = [8, 384], strides = [1, 1]} : vector<8x512xf32> to vector<8x384xf32>
    %c56 = arith.constant 56 : index
    %c0_10 = arith.constant 0 : index
    %17 = vector.load %arg6[%c56, %c0_10] : memref<72x768xf32, #tpu.memory_space<vmem>>, vector<8x384xf32>
    tpu.vector_store %arg6[%c56, %c0_10], %16 {strides = array<i32>} : memref<72x768xf32, #tpu.memory_space<vmem>>, vector<8x384xf32>,
    %18 = vector.extract_strided_slice %1 {offsets = [0, 84], sizes = [8, 384], strides = [1, 1]} : vector<8x512xf32> to vector<8x384xf32>
    %c64 = arith.constant 64 : index
    %c0_11 = arith.constant 0 : index
    %19 = vector.load %arg6[%c64, %c0_11] : memref<72x768xf32, #tpu.memory_space<vmem>>, vector<8x384xf32>
    tpu.vector_store %arg6[%c64, %c0_11], %18 {strides = array<i32>} : memref<72x768xf32, #tpu.memory_space<vmem>>, vector<8x384xf32>,
    %c1 = arith.constant 1 : index
    %c0_12 = arith.constant 0 : index
    %c0_13 = arith.constant 0 : index
    %20 = vector.load %arg0[%c1, %c0_12, %c0_13] : memref<2x8x512xf32, #tpu.memory_space<vmem>>, vector<1x8x512xf32>
    %21 = vector.shape_cast %20 : vector<1x8x512xf32> to vector<8x512xf32>
    %22 = vector.extract_strided_slice %21 {offsets = [0, 0], sizes = [8, 384], strides = [1, 1]} : vector<8x512xf32> to vector<8x384xf32>
    %c0_14 = arith.constant 0 : index
    %c384 = arith.constant 384 : index
    %23 = vector.load %arg6[%c0_14, %c384] : memref<72x768xf32, #tpu.memory_space<vmem>>, vector<8x384xf32>
    tpu.vector_store %arg6[%c0_14, %c384], %22 {strides = array<i32>} : memref<72x768xf32, #tpu.memory_space<vmem>>, vector<8x384xf32>,
    %24 = vector.extract_strided_slice %21 {offsets = [0, 2], sizes = [8, 384], strides = [1, 1]} : vector<8x512xf32> to vector<8x384xf32>
    %c8_15 = arith.constant 8 : index
    %c384_16 = arith.constant 384 : index
    %25 = vector.load %arg6[%c8_15, %c384_16] : memref<72x768xf32, #tpu.memory_space<vmem>>, vector<8x384xf32>
    tpu.vector_store %arg6[%c8_15, %c384_16], %24 {strides = array<i32>} : memref<72x768xf32, #tpu.memory_space<vmem>>, vector<8x384xf32>,
    %26 = vector.extract_strided_slice %21 {offsets = [0, 4], sizes = [8, 384], strides = [1, 1]} : vector<8x512xf32> to vector<8x384xf32>
    %c16_17 = arith.constant 16 : index
    %c384_18 = arith.constant 384 : index
    %27 = vector.load %arg6[%c16_17, %c384_18] : memref<72x768xf32, #tpu.memory_space<vmem>>, vector<8x384xf32>
    tpu.vector_store %arg6[%c16_17, %c384_18], %26 {strides = array<i32>} : memref<72x768xf32, #tpu.memory_space<vmem>>, vector<8x384xf32>,
    %28 = vector.extract_strided_slice %21 {offsets = [0, 40], sizes = [8, 384], strides = [1, 1]} : vector<8x512xf32> to vector<8x384xf32>
    %c24_19 = arith.constant 24 : index
    %c384_20 = arith.constant 384 : index
    %29 = vector.load %arg6[%c24_19, %c384_20] : memref<72x768xf32, #tpu.memory_space<vmem>>, vector<8x384xf32>
    tpu.vector_store %arg6[%c24_19, %c384_20], %28 {strides = array<i32>} : memref<72x768xf32, #tpu.memory_space<vmem>>, vector<8x384xf32>,
    %30 = vector.extract_strided_slice %21 {offsets = [0, 42], sizes = [8, 384], strides = [1, 1]} : vector<8x512xf32> to vector<8x384xf32>
    %c32_21 = arith.constant 32 : index
    %c384_22 = arith.constant 384 : index
    %31 = vector.load %arg6[%c32_21, %c384_22] : memref<72x768xf32, #tpu.memory_space<vmem>>, vector<8x384xf32>
    tpu.vector_store %arg6[%c32_21, %c384_22], %30 {strides = array<i32>} : memref<72x768xf32, #tpu.memory_space<vmem>>, vector<8x384xf32>,
    %32 = vector.extract_strided_slice %21 {offsets = [0, 44], sizes = [8, 384], strides = [1, 1]} : vector<8x512xf32> to vector<8x384xf32>
    %c40_23 = arith.constant 40 : index
    %c384_24 = arith.constant 384 : index
    %33 = vector.load %arg6[%c40_23, %c384_24] : memref<72x768xf32, #tpu.memory_space<vmem>>, vector<8x384xf32>
    tpu.vector_store %arg6[%c40_23, %c384_24], %32 {strides = array<i32>} : memref<72x768xf32, #tpu.memory_space<vmem>>, vector<8x384xf32>,
    %34 = vector.extract_strided_slice %21 {offsets = [0, 80], sizes = [8, 384], strides = [1, 1]} : vector<8x512xf32> to vector<8x384xf32>
    %c48_25 = arith.constant 48 : index
    %c384_26 = arith.constant 384 : index
    %35 = vector.load %arg6[%c48_25, %c384_26] : memref<72x768xf32, #tpu.memory_space<vmem>>, vector<8x384xf32>
    tpu.vector_store %arg6[%c48_25, %c384_26], %34 {strides = array<i32>} : memref<72x768xf32, #tpu.memory_space<vmem>>, vector<8x384xf32>,
    %36 = vector.extract_strided_slice %21 {offsets = [0, 82], sizes = [8, 384], strides = [1, 1]} : vector<8x512xf32> to vector<8x384xf32>
    %c56_27 = arith.constant 56 : index
    %c384_28 = arith.constant 384 : index
    %37 = vector.load %arg6[%c56_27, %c384_28] : memref<72x768xf32, #tpu.memory_space<vmem>>, vector<8x384xf32>
    tpu.vector_store %arg6[%c56_27, %c384_28], %36 {strides = array<i32>} : memref<72x768xf32, #tpu.memory_space<vmem>>, vector<8x384xf32>,
    %38 = vector.extract_strided_slice %21 {offsets = [0, 84], sizes = [8, 384], strides = [1, 1]} : vector<8x512xf32> to vector<8x384xf32>
    %c64_29 = arith.constant 64 : index
    %c384_30 = arith.constant 384 : index
    %39 = vector.load %arg6[%c64_29, %c384_30] : memref<72x768xf32, #tpu.memory_space<vmem>>, vector<8x384xf32>
    tpu.vector_store %arg6[%c64_29, %c384_30], %38 {strides = array<i32>} : memref<72x768xf32, #tpu.memory_space<vmem>>, vector<8x384xf32>,
    %c0_31 = arith.constant 0 : index
    %c0_32 = arith.constant 0 : index
    %40 = vector.load %arg1[%c0_31, %c0_32] : memref<8x72xf32, #tpu.memory_space<vmem>>, vector<8x72xf32>
    %c0_33 = arith.constant 0 : index
    %c0_34 = arith.constant 0 : index
    %41 = vector.load %arg6[%c0_33, %c0_34] : memref<72x768xf32, #tpu.memory_space<vmem>>, vector<72x768xf32>
    %cst = arith.constant dense<0.000000e+00> : vector<8x768xf32>
    %42 = tpu.matmul %40, %41, %cst {dimension_numbers = #tpu.dot_dimension_numbers<[1], [0], [0], [1], [0, 0, 1, 1], [], []>} : vector<8x72xf32>, vector<72x768xf32>, vector<8x768xf32> -> vector<8x768xf32>
    %c0_35 = arith.constant 0 : index
    %c0_36 = arith.constant 0 : index
    %43 = vector.load %arg4[%c0_35, %c0_36] : memref<1x768xf32, #tpu.memory_space<vmem>>, vector<1x768xf32>
    %44 = vector.broadcast %43 : vector<1x768xf32> to vector<8x768xf32>
    %45 = arith.mulf %42, %44 : vector<8x768xf32>
    %cst_37 = arith.constant dense<0.000000e+00> : vector<8xf32>
    %46 = vector.multi_reduction <add>, %45, %cst_37 [1] : vector<8x768xf32> to vector<8xf32>
    %47 = vector.shape_cast %46 : vector<8xf32> to vector<8x1xf32>
    %cst_38 = arith.constant 0.001953125 : f32
    %48 = vector.broadcast %cst_38 : f32 to vector<8x1xf32>
    %49 = arith.mulf %47, %48 : vector<8x1xf32>
    %50 = vector.broadcast %49 : vector<8x1xf32> to vector<8x768xf32>
    %51 = arith.subf %42, %50 : vector<8x768xf32>
    %52 = vector.broadcast %43 : vector<1x768xf32> to vector<8x768xf32>
    %53 = arith.mulf %51, %52 : vector<8x768xf32>
    %54 = arith.mulf %53, %53 : vector<8x768xf32>
    %cst_39 = arith.constant dense<0.000000e+00> : vector<8xf32>
    %55 = vector.multi_reduction <add>, %54, %cst_39 [1] : vector<8x768xf32> to vector<8xf32>
    %56 = vector.shape_cast %55 : vector<8xf32> to vector<8x1xf32>
    %cst_40 = arith.constant 0.001953125 : f32
    %57 = vector.broadcast %cst_40 : f32 to vector<8x1xf32>
    %58 = arith.mulf %56, %57 : vector<8x1xf32>
    %c0_41 = arith.constant 0 : index
    %c0_42 = arith.constant 0 : index
    %59 = vector.load %arg2[%c0_41, %c0_42] : memref<8x1xf32, #tpu.memory_space<vmem>>, vector<8x1xf32>
    %cst_43 = arith.constant 9.99999974E-6 : f32
    %60 = vector.broadcast %cst_43 : f32 to vector<8x1xf32>
    %61 = arith.addf %58, %60 : vector<8x1xf32>
    %62 = math.rsqrt %61 : vector<8x1xf32>
    %63 = arith.mulf %59, %62 : vector<8x1xf32>
    %c0_44 = arith.constant 0 : index
    %c0_45 = arith.constant 0 : index
    %64 = vector.load %arg3[%c0_44, %c0_45] : memref<8x1xf32, #tpu.memory_space<vmem>>, vector<8x1xf32>
    %65 = arith.mulf %49, %63 : vector<8x1xf32>
    %66 = arith.subf %64, %65 : vector<8x1xf32>
    %67 = vector.broadcast %63 : vector<8x1xf32> to vector<8x768xf32>
    %68 = arith.mulf %42, %67 : vector<8x768xf32>
    %69 = vector.broadcast %66 : vector<8x1xf32> to vector<8x768xf32>
    %70 = arith.addf %68, %69 : vector<8x768xf32>
    %cst_46 = arith.constant 0.000000e+00 : f32
    %71 = vector.broadcast %cst_46 : f32 to vector<8x768xf32>
    %72 = arith.maximumf %70, %71 : vector<8x768xf32>
    %73 = vector.extract_strided_slice %72 {offsets = [0, 0], sizes = [8, 384], strides = [1, 1]} : vector<8x768xf32> to vector<8x384xf32>
    %c0_47 = arith.constant 0 : index
    %c0_48 = arith.constant 0 : index
    %c0_49 = arith.constant 0 : index
    %74 = vector.load %arg5[%c0_47, %c0_48, %c0_49] : memref<2x8x384xf32, #tpu.memory_space<vmem>>, vector<1x8x384xf32>
    %75 = vector.shape_cast %74 : vector<1x8x384xf32> to vector<8x384xf32>
    %76 = vector.shape_cast %73 : vector<8x384xf32> to vector<1x8x384xf32>
    tpu.vector_store %arg5[%c0_47, %c0_48, %c0_49], %76 {strides = array<i32>} : memref<2x8x384xf32, #tpu.memory_space<vmem>>, vector<1x8x384xf32>,
    %77 = vector.extract_strided_slice %72 {offsets = [0, 384], sizes = [8, 384], strides = [1, 1]} : vector<8x768xf32> to vector<8x384xf32>
    %c1_50 = arith.constant 1 : index
    %c0_51 = arith.constant 0 : index
    %c0_52 = arith.constant 0 : index
    %78 = vector.load %arg5[%c1_50, %c0_51, %c0_52] : memref<2x8x384xf32, #tpu.memory_space<vmem>>, vector<1x8x384xf32>
    %79 = vector.shape_cast %78 : vector<1x8x384xf32> to vector<8x384xf32>
    %80 = vector.shape_cast %77 : vector<8x384xf32> to vector<1x8x384xf32>
    tpu.vector_store %arg5[%c1_50, %c0_51, %c0_52], %80 {strides = array<i32>} : memref<2x8x384xf32, #tpu.memory_space<vmem>>, vector<1x8x384xf32>,
    return
  }
}

</mosaic_0001>

<bundles_post_ra>
// kernel: tpu_custom_call.1
= control target key start
LH: loop header
LB: loop body
LE: loop exit
PB: predicated region body
PF: predicated region fallthrough
CT: control target
= control target key end

     0   :  { %10 = vsyncpa [#allocation4], 0  ;;  %s1293_s0 = inlined_call_operand.hbm [shape: f32[2,8,512], index: 0, kind: input, shape index: {}]   ;;  %s1294_s1 = inlined_call_operand.vmem [shape: f32[8,72], index: 1, kind: input, shape index: {}]   ;;  %s1295_s2 = inlined_call_operand.vmem [shape: f32[8,1], index: 2, kind: input, shape index: {}]   ;;  %s1296_s3 = inlined_call_operand.vmem [shape: f32[8,1], index: 3, kind: input, shape index: {}]   ;;  %s1297_s4 = inlined_call_operand.vmem [shape: f32[1,768], index: 4, kind: input, shape index: {}]   ;;  %s1298_s5 = inlined_call_operand.hbm [shape: f32[2,8,384], index: 5, kind: output, shape index: {}]  }
   0x1   :  { %11 = vsyncpa [#allocation5], 0  ;;  %s1000_s18 = smov [#allocation3]   ;;  %s952_s22 = scalar_lea.hbm %s1293_s0, 1024 }
   0x2   :  { %s17_s19 = sshll.u32 %s1000_s18, 4  ;;  %p953_p0 = scmp.ne.s32.totalorder %s1293_s0, %s952_s22  ;;  %s18_s19 = int_to_ptr.vmem [resolvable:$true] %s17_s19 }
   0x3   :  { %p956_p1 = scmp.lt.u32.totalorder %s952_s22, %s1293_s0 }
   0x5   :  { %p958_p2 = pnand %p956_p1, %p953_p0 }
   0x7   :  { %961 = shalt.err (!%p958_p2)
}
   0x8   :  { %s962_s27 = scalar_lea.vmem %s18_s19, 1024  ;;  %p967_p4 = scmp.lt.s32.totalorder %s18_s19, %s18_s19 }
   0x9   :  { %p963_p3 = scmp.ne.s32.totalorder %s18_s19, %s962_s27  ;;  %p968_p5 = scmp.lt.s32.totalorder %s962_s27, %s962_s27 }
   0xb   :  { %p969_p6 = por %p968_p5, %p967_p4 }
   0xd   :  { %p970_p7 = pnand %p969_p6, %p963_p3 }
   0xf   :  { %973 = shalt.err (!%p970_p7)
}
  0x10   :  { %s1001_s28 = smov 512   ;;  %s1002_s29 = smov 32  }
  0x11   :  { %23 = dma.hbm_to_vmem [thread:$0]  %s1293_s0, 1024, %s18_s19, [#allocation4], %s1001_s28, %s1001_s28, %s1002_s29  }
  0x12   :  { %996 = dma.done.wait [#allocation4], 1024  }
  0x13   :  { %997 = vsyncadd [#allocation4], 4294966272  ;;  %v1058_v0 = vld [vmem:[#allocation3 + $0x8] sm:$0xff]  ;;  %v1060_v1 = vld [vmem:[#allocation3 + $0x10] sm:$0xff]  ;;  %s1003_s7 = smov 124   ;;  %s1004_s8 = smov 126  }
  0x14   :  { %v1062_v2 = vld [vmem:[#allocation3] sm:$0xff]  ;;  %v818_v3 = vpack.i.bf16 %v1060_v1, %v1058_v0  ;;  %s1005_s0 = smov 88   ;;  %s1006_s9 = smov 84   ;;  %v38_v6 = vld [vmem:[#allocation3 + $0x18] sm:$0xff]  ;;  %v1081_v7 = vld [vmem:[#allocation3 + $0x28] sm:$0xff]  ;;  %v1011_v12 = vmov 0.0  }
  0x15   :  { %v1066_v4 = vld [vmem:[#allocation3 + $0x20] sm:$0xff]  ;;  %s1007_s10 = smov 86   ;;  %s1008_s11 = smov 46   ;;  %v878_v8 = vpack.i.bf16 %v38_v6, %v1081_v7  ;;  %v1085_v9 = vld [vmem:[#allocation3 + $0x30] sm:$0xff]  ;;  %v194_v10 = vld [vmem:[#allocation3 + $0x38] sm:$0xff]  ;;  %461 = vmatprep.mubr.f32.mxu0 %v1011_v12  ;;  %532 = vmatprep.mubr.f32.mxu1 %v1011_v12  ;;  %vm54_vm0 = vcmask 1031168  }
  0x16   :  { %819 = vrot.lane.b32.xlu1 %v818_v3, %s1003_s7  ;;  %809 = vrot.lane.b32.xlu0 %v818_v3, %s1004_s8  ;;  %v813_v5 = vpack.i.bf16 %v1066_v4, %v1062_v2  ;;  %s1009_s12 = smov 48   ;;  %s1010_s13 = smov 44   ;;  %v883_v11 = vpack.i.bf16 %v194_v10, %v1085_v9  ;;  %vm72_vm1 = vcmask 1014784   ;;  %vm90_vm2 = vcmask 719872  }
  0x17   :  { %vm108_vm3 = vcmask 703488   ;;  %vm126_vm4 = vcmask 687104   ;;  %vm144_vm5 = vcmask 392192   ;;  %vm162_vm6 = vcmask 375808  }
  0x18   :  { %vm180_vm7 = vcmask 359424   ;;  %vm393_vm8 = vcmask 588800  }
  0x1a   :  { %824 = vrot.lane.b32.xlu1 %v818_v3, %s1005_s0  ;;  %814 = vrot.lane.b32.xlu0 %v813_v5, %s1004_s8 }
  0x1e   :  { %834 = vrot.lane.b32.xlu1 %v813_v5, %s1005_s0  ;;  %829 = vrot.lane.b32.xlu0 %v813_v5, %s1003_s7 }
  0x22   :  { %844 = vrot.lane.b32.xlu1 %v818_v3, %s1006_s9  ;;  %839 = vrot.lane.b32.xlu0 %v818_v3, %s1007_s10 }
  0x26   :  { %854 = vrot.lane.b32.xlu1 %v813_v5, %s1006_s9  ;;  %849 = vrot.lane.b32.xlu0 %v813_v5, %s1007_s10 }
  0x2a   :  { %864 = vrot.lane.b32.xlu1 %v818_v3, %s1008_s11  ;;  %859 = vrot.lane.b32.xlu0 %v818_v3, %s1009_s12 }
  0x2e   :  { %874 = vrot.lane.b32.xlu1 %v813_v5, %s1008_s11  ;;  %869 = vrot.lane.b32.xlu0 %v813_v5, %s1009_s12 }
  0x32   :  { %174 = vrot.lane.b32.xlu1 %v1058_v0, %s1010_s13  ;;  %879 = vrot.lane.b32.xlu0 %v878_v8, %s1004_s8 }
  0x36   :  { %884 = vrot.lane.b32.xlu1 %v883_v11, %s1004_s8  ;;  %176 = vrot.lane.b32.xlu0 %v1060_v1, %s1010_s13 }
  0x3a   :  { %894 = vrot.lane.b32.xlu1 %v878_v8, %s1005_s0  ;;  %889 = vrot.lane.b32.xlu0 %v878_v8, %s1003_s7 }
  0x3e   :  { %899 = vrot.lane.b32.xlu1 %v883_v11, %s1003_s7  ;;  %172 = vrot.lane.b32.xlu0 %v1062_v2, %s1010_s13 }
  0x42   :  { %909 = vrot.lane.b32.xlu1 %v878_v8, %s1007_s10  ;;  %904 = vrot.lane.b32.xlu0 %v883_v11, %s1005_s0 }
  0x46   :  { %919 = vrot.lane.b32.xlu1 %v883_v11, %s1007_s10  ;;  %914 = vrot.lane.b32.xlu0 %v878_v8, %s1006_s9 }
  0x4a   :  { %929 = vrot.lane.b32.xlu1 %v878_v8, %s1009_s12  ;;  %924 = vrot.lane.b32.xlu0 %v883_v11, %s1006_s9 }
  0x4e   :  { %939 = vrot.lane.b32.xlu1 %v883_v11, %s1009_s12  ;;  %934 = vrot.lane.b32.xlu0 %v878_v8, %s1008_s11 }
  0x52   :  { %321 = vrot.lane.b32.xlu1 %v1066_v4, %s1010_s13  ;;  %944 = vrot.lane.b32.xlu0 %v883_v11, %s1008_s11 }
  0x56   :  { %178 = vrot.lane.b32.xlu1 %v38_v6, %s1010_s13  ;;  %323 = vrot.lane.b32.xlu0 %v1081_v7, %s1010_s13 }
  0x5a   :  { %327 = vrot.lane.b32.xlu1 %v194_v10, %s1010_s13  ;;  %325 = vrot.lane.b32.xlu0 %v1085_v9, %s1010_s13 }
  0x88   :  { %v1108_v13 = vpop.permute.xlu1 %819  ;;  %v1110_v14 = vpop.permute.xlu0 %809 }
  0x89   :  { %v812_v15 = vunpack.i.h.bf16 %v1110_v14  ;;  %v811_v16 = vunpack.i.l.bf16 %v1110_v14  ;;  %v822_v17 = vunpack.i.h.bf16 %v1108_v13  ;;  %v821_v18 = vunpack.i.l.bf16 %v1108_v13  ;;  %v1215_v13 = vld [vmem:[%s1294_s1] sm:$0xff] }
  0x8b   :  { %v56_v19 = vsel %vm54_vm0, %v811_v16, %v812_v15  ;;  %v74_v27 = vsel %vm72_vm1, %v821_v18, %v822_v17 }
  0x8c   :  { %v1119_v20 = vpop.permute.xlu1 %824  ;;  %v1121_v21 = vpop.permute.xlu0 %814  ;;  %v744_v22 = vpack.c.bf16 %v56_v19, %v1058_v0 }
  0x8d   :  { %v827_v23 = vunpack.i.h.bf16 %v1119_v20  ;;  %v826_v24 = vunpack.i.l.bf16 %v1119_v20  ;;  %v816_v25 = vunpack.i.l.bf16 %v1121_v21 }
  0x8e   :  { %745 = vmatprep.subr.bf16.mxu0 %v744_v22 }
  0x8f   :  { %v55_v26 = vsel %vm54_vm0, %v816_v25, %v811_v16  ;;  %v92_v28 = vsel %vm90_vm2, %v826_v24, %v827_v23  ;;  %v817_v16 = vunpack.i.h.bf16 %v1121_v21 }
  0x90   :  { %v1134_v29 = vpop.permute.xlu1 %834  ;;  %v1136_v30 = vpop.permute.xlu0 %829  ;;  %v746_v31 = vpack.c.bf16 %v55_v26, %v1062_v2  ;;  %v748_v32 = vpack.c.bf16 %v92_v28, %v74_v27 }
  0x91   :  { %v836_v33 = vunpack.i.l.bf16 %v1134_v29  ;;  %v831_v34 = vunpack.i.l.bf16 %v1136_v30  ;;  %v832_v14 = vunpack.i.h.bf16 %v1136_v30 }
  0x92   :  { %747 = vmatpush1.bf16.msra.mxu0 %v746_v31 }
  0x93   :  { %749 = vmatprep.subr.bf16.mxu0 %v748_v32  ;;  %v73_v35 = vsel %vm72_vm1, %v831_v34, %v821_v18  ;;  %v91_v36 = vsel %vm90_vm2, %v836_v33, %v826_v24  ;;  %v837_v33 = vunpack.i.h.bf16 %v1134_v29 }
  0x94   :  { %v1143_v37 = vpop.permute.xlu1 %844  ;;  %v1145_v38 = vpop.permute.xlu0 %839  ;;  %v750_v39 = vpack.c.bf16 %v91_v36, %v73_v35 }
  0x95   :  { %v847_v40 = vunpack.i.h.bf16 %v1143_v37  ;;  %v846_v41 = vunpack.i.l.bf16 %v1143_v37  ;;  %v842_v42 = vunpack.i.h.bf16 %v1145_v38  ;;  %v841_v43 = vunpack.i.l.bf16 %v1145_v38 }
  0x96   :  { %751 = vmatpush1.bf16.msra.mxu0 %v750_v39 }
  0x97   :  { %v110_v44 = vsel %vm108_vm3, %v841_v43, %v842_v42  ;;  %v128_v45 = vsel %vm126_vm4, %v846_v41, %v847_v40 }
  0x98   :  { %v1157_v46 = vpop.permute.xlu1 %854  ;;  %v1159_v47 = vpop.permute.xlu0 %849  ;;  %v752_v48 = vpack.c.bf16 %v128_v45, %v110_v44 }
  0x99   :  { %v856_v49 = vunpack.i.l.bf16 %v1157_v46  ;;  %v851_v50 = vunpack.i.l.bf16 %v1159_v47 }
  0x9a   :  { %753 = vmatprep.subr.bf16.mxu0 %v752_v48 }
  0x9b   :  { %v109_v51 = vsel %vm108_vm3, %v851_v50, %v841_v43  ;;  %v127_v52 = vsel %vm126_vm4, %v856_v49, %v846_v41 }
  0x9c   :  { %v1165_v53 = vpop.permute.xlu1 %864  ;;  %v1167_v54 = vpop.permute.xlu0 %859  ;;  %v754_v55 = vpack.c.bf16 %v127_v52, %v109_v51 }
  0x9d   :  { %v867_v56 = vunpack.i.h.bf16 %v1165_v53  ;;  %v866_v57 = vunpack.i.l.bf16 %v1165_v53  ;;  %v862_v58 = vunpack.i.h.bf16 %v1167_v54  ;;  %v861_v59 = vunpack.i.l.bf16 %v1167_v54 }
  0x9e   :  { %755 = vmatpush1.bf16.msra.mxu0 %v754_v55 }
  0x9f   :  { %v146_v60 = vsel %vm144_vm5, %v861_v59, %v862_v58  ;;  %v164_v61 = vsel %vm162_vm6, %v866_v57, %v867_v56 }
  0xa0   :  { %v1179_v62 = vpop.permute.xlu1 %874  ;;  %v1181_v63 = vpop.permute.xlu0 %869  ;;  %v756_v0 = vpack.c.bf16 %v164_v61, %v146_v60 }
  0xa1   :  { %v876_v2 = vunpack.i.l.bf16 %v1179_v62  ;;  %v871_v3 = vunpack.i.l.bf16 %v1181_v63 }
  0xa2   :  { %757 = vmatprep.subr.bf16.mxu0 %v756_v0 }
  0xa3   :  { %v145_v5 = vsel %vm144_vm5, %v871_v3, %v861_v59  ;;  %v163_v6 = vsel %vm162_vm6, %v876_v2, %v866_v57 }
  0xa4   :  { %v175_v8 = vpop.permute.xlu1 %174  ;;  %v880_v10 = vpop.permute.xlu0 %879  ;;  %v758_v11 = vpack.c.bf16 %v163_v6, %v145_v5  ;;  %v852_v5 = vunpack.i.h.bf16 %v1159_v47 }
  0xa5   :  { %v882_v18 = vunpack.i.h.bf16 %v880_v10  ;;  %v881_v19 = vunpack.i.l.bf16 %v880_v10 }
  0xa6   :  { %759 = vmatpush1.bf16.msra.mxu0 %v758_v11 }
  0xa7   :  { %v210_v22 = vsel %vm54_vm0, %v817_v16, %v881_v19  ;;  %v57_v24 = vsel %vm54_vm0, %v812_v15, %v882_v18  ;;  %v857_v16 = vunpack.i.h.bf16 %v1157_v46 }
  0xa8   :  { %v885_v25 = vpop.permute.xlu1 %884  ;;  %v1192_v26 = vpop.permute.xlu0 %176  ;;  %v760_v27 = vpack.c.bf16 %v210_v22, %v1066_v4  ;;  %v762_v28 = vpack.c.bf16 %v57_v24, %v1060_v1 }
  0xa9   :  { %v182_v21 = vsel %vm180_vm7, %v175_v8, %v1192_v26  ;;  %v887_v31 = vunpack.i.h.bf16 %v885_v25  ;;  %v886_v32 = vunpack.i.l.bf16 %v885_v25 }
  0xaa   :  { %413 = vmatprep.subr.mxu0 %v182_v21  ;;  %761 = vmatprep.subr.bf16.mxu1 %v760_v27 }
  0xab   :  { %763 = vmatpush1.bf16.msra.mxu1 %v762_v28  ;;  %v212_v1 = vsel %vm54_vm0, %v886_v32, %v887_v31  ;;  %v211_v30 = vsel %vm54_vm0, %v881_v19, %v886_v32 }
  0xac   :  { %v895_v15 = vpop.permute.xlu1 %894  ;;  %v890_v34 = vpop.permute.xlu0 %889  ;;  %v776_v52 = vpack.c.bf16 %v212_v1, %v1085_v9  ;;  %v877_v1 = vunpack.i.h.bf16 %v1179_v62 }
  0xad   :  { %v897_v35 = vunpack.i.h.bf16 %v895_v15  ;;  %v896_v36 = vunpack.i.l.bf16 %v895_v15  ;;  %v892_v39 = vunpack.i.h.bf16 %v890_v34  ;;  %v891_v4 = vunpack.i.l.bf16 %v890_v34 }
  0xaf   :  { %v227_v41 = vsel %vm72_vm1, %v832_v14, %v891_v4  ;;  %v244_v43 = vsel %vm90_vm2, %v837_v33, %v896_v36  ;;  %v75_v44 = vsel %vm72_vm1, %v822_v17, %v892_v39  ;;  %v93_v29 = vsel %vm90_vm2, %v827_v23, %v897_v35 }
  0xb0   :  { %v900_v45 = vpop.permute.xlu1 %899  ;;  %v173_v48 = vpop.permute.xlu0 %172  ;;  %v764_v49 = vpack.c.bf16 %v244_v43, %v227_v41  ;;  %v766_v50 = vpack.c.bf16 %v93_v29, %v75_v44  ;;  %v778_v17 = vpack.c.bf16 %v211_v30, %v1081_v7 }
  0xb1   :  { %v181_v51 = vsel %vm180_vm7, %v173_v48, %v175_v8  ;;  %v902_v20 = vunpack.i.h.bf16 %v900_v45  ;;  %v901_v23 = vunpack.i.l.bf16 %v900_v45 }
  0xb2   :  { %414 = vmatpush1.msra.mxu0 %v181_v51  ;;  %765 = vmatprep.subr.bf16.mxu1 %v764_v49 }
  0xb3   :  { %767 = vmatpush1.bf16.msra.mxu1 %v766_v50  ;;  %777 = vmatprep.subr.bf16.mxu0 %v776_v52  ;;  %v228_v0 = vsel %vm72_vm1, %v891_v4, %v901_v23  ;;  %v229_v2 = vsel %vm72_vm1, %v901_v23, %v902_v20 }
  0xb4   :  { %v910_v55 = vpop.permute.xlu1 %909  ;;  %v905_v57 = vpop.permute.xlu0 %904  ;;  %741 = vmatmul.mubr.msk.f32.vlgmr.msra.gmra.mrb[0].mxu0 %vm393_vm8, %v1215_v13 }
  0xb5   :  { %v907_v9 = vunpack.i.h.bf16 %v905_v57  ;;  %v906_v59 = vunpack.i.l.bf16 %v905_v57  ;;  %779 = vmatpush1.bf16.msra.mxu0 %v778_v17  ;;  %603 = vmatprep.mubr.f32.mxu0 %v1011_v12  ;;  %v912_v60 = vunpack.i.h.bf16 %v910_v55  ;;  %v911_v61 = vunpack.i.l.bf16 %v910_v55 }
  0xb7   :  { %v245_v7 = vsel %vm90_vm2, %v896_v36, %v906_v59  ;;  %v246_v3 = vsel %vm90_vm2, %v906_v59, %v907_v9  ;;  %v261_v19 = vsel %vm108_vm3, %v852_v5, %v911_v61  ;;  %v111_v22 = vsel %vm108_vm3, %v842_v42, %v912_v60  ;;  %v610_v5 = vld [vmem:[%s1297_s4] sm:$0x3f] }
  0xb8   :  { %v782_v6 = vpack.c.bf16 %v245_v7, %v228_v0  ;;  %v920_v8 = vpop.permute.xlu1 %919  ;;  %v915_v10 = vpop.permute.xlu0 %914  ;;  %v780_v11 = vpack.c.bf16 %v246_v3, %v229_v2  ;;  %v612_v2 = vlaneseq }
  0xb9   :  { %v917_v18 = vunpack.i.h.bf16 %v915_v10  ;;  %v916_v12 = vunpack.i.l.bf16 %v915_v10  ;;  %v922_v24 = vunpack.i.h.bf16 %v920_v8  ;;  %v921_v25 = vunpack.i.l.bf16 %v920_v8 }
  0xba   :  { %781 = vmatprep.subr.bf16.mxu0 %v780_v11 }
  0xbb   :  { %783 = vmatpush1.bf16.msra.mxu0 %v782_v6  ;;  %v278_v47 = vsel %vm126_vm4, %v857_v16, %v916_v12  ;;  %v129_v27 = vsel %vm126_vm4, %v847_v40, %v917_v18  ;;  %v262_v38 = vsel %vm108_vm3, %v911_v61, %v921_v25  ;;  %v263_v34 = vsel %vm108_vm3, %v921_v25, %v922_v24 }
  0xbc   :  { %v930_v28 = vpop.permute.xlu1 %929  ;;  %v925_v46 = vpop.permute.xlu0 %924  ;;  %v768_v21 = vpack.c.bf16 %v278_v47, %v261_v19  ;;  %v770_v31 = vpack.c.bf16 %v129_v27, %v111_v22  ;;  %v872_v40 = vunpack.i.h.bf16 %v1181_v63 }
  0xbd   :  { %v927_v32 = vunpack.i.h.bf16 %v925_v46  ;;  %v926_v33 = vunpack.i.l.bf16 %v925_v46  ;;  %v932_v14 = vunpack.i.h.bf16 %v930_v28  ;;  %v931_v15 = vunpack.i.l.bf16 %v930_v28 }
  0xbe   :  { %769 = vmatprep.subr.bf16.mxu1 %v768_v21 }
  0xbf   :  { %v279_v42 = vsel %vm126_vm4, %v916_v12, %v926_v33  ;;  %771 = vmatpush1.bf16.msra.mxu1 %v770_v31  ;;  %v280_v37 = vsel %vm126_vm4, %v926_v33, %v927_v32  ;;  %v295_v44 = vsel %vm144_vm5, %v872_v40, %v931_v15  ;;  %v147_v29 = vsel %vm144_vm5, %v862_v58, %v932_v14 }
  0xc0   :  { %v786_v35 = vpack.c.bf16 %v279_v42, %v262_v38  ;;  %v940_v36 = vpop.permute.xlu1 %939  ;;  %v935_v39 = vpop.permute.xlu0 %934  ;;  %v784_v4 = vpack.c.bf16 %v280_v37, %v263_v34 }
  0xc1   :  { %v937_v41 = vunpack.i.h.bf16 %v935_v39  ;;  %v936_v43 = vunpack.i.l.bf16 %v935_v39  ;;  %v942_v30 = vunpack.i.h.bf16 %v940_v36  ;;  %v941_v45 = vunpack.i.l.bf16 %v940_v36 }
  0xc2   :  { %785 = vmatprep.subr.bf16.mxu0 %v784_v4 }
  0xc3   :  { %787 = vmatpush1.bf16.msra.mxu0 %v786_v35  ;;  %v312_v63 = vsel %vm162_vm6, %v877_v1, %v936_v43  ;;  %v165_v48 = vsel %vm162_vm6, %v867_v56, %v937_v41  ;;  %v296_v54 = vsel %vm144_vm5, %v931_v15, %v941_v45  ;;  %v297_v20 = vsel %vm144_vm5, %v941_v45, %v942_v30 }
  0xc4   :  { %v322_v49 = vpop.permute.xlu1 %321  ;;  %v945_v62 = vpop.permute.xlu0 %944  ;;  %v772_v50 = vpack.c.bf16 %v312_v63, %v295_v44  ;;  %v774_v51 = vpack.c.bf16 %v165_v48, %v147_v29 }
  0xc5   :  { %v947_v52 = vunpack.i.h.bf16 %v945_v62  ;;  %v946_v17 = vunpack.i.l.bf16 %v945_v62 }
  0xc6   :  { %773 = vmatprep.subr.bf16.mxu1 %v772_v50 }
  0xc7   :  { %v313_v58 = vsel %vm162_vm6, %v936_v43, %v946_v17  ;;  %775 = vmatpush1.bf16.msra.mxu1 %v774_v51  ;;  %v314_v23 = vsel %vm162_vm6, %v946_v17, %v947_v52 }
  0xc8   :  { %v790_v55 = vpack.c.bf16 %v313_v58, %v296_v54  ;;  %v179_v53 = vpop.permute.xlu1 %178  ;;  %v324_v57 = vpop.permute.xlu0 %323  ;;  %v788_v56 = vpack.c.bf16 %v314_v23, %v297_v20 }
  0xc9   :  { %v329_v9 = vsel %vm180_vm7, %v322_v49, %v324_v57  ;;  %v183_v59 = vsel %vm180_vm7, %v1192_v26, %v179_v53  ;;  %v613_v26 = vshrl.u32 %v612_v2, 7  ;;  %v686_v2 = vld [vmem:[%s1296_s3] sm:$0xff] }
  0xca   :  { %484 = vmatprep.subr.mxu1 %v329_v9  ;;  %789 = vmatprep.subr.bf16.mxu0 %v788_v56  ;;  %v1012_v56 = vmov 0  }
  0xcb   :  { %485 = vmatpush1.msra.mxu1 %v183_v59  ;;  %791 = vmatpush1.bf16.msra.mxu0 %v790_v55  ;;  %v614_v3 = vsub.s32 0, %v613_v26  ;;  %v618_v6 = vsub.s32 1, %v613_v26  ;;  %v626_v22 = vsub.s32 3, %v613_v26  ;;  %v630_v25 = vsub.s32 4, %v613_v26 }
  0xcc   :  { %v328_v60 = vpop.permute.xlu1 %327  ;;  %v326_v61 = vpop.permute.xlu0 %325  ;;  %742 = vmatmul.mubr.msk.f32.vlgmr.msra.gmra.mrb[0].mxu1 %vm393_vm8, %v1215_v13  ;;  %v634_v27 = vsub.s32 5, %v613_v26  ;;  %948 = vset.pattern.permute.xlu0 %v1012_v56 }
  0xcd   :  { %v330_v0 = vsel %vm180_vm7, %v324_v57, %v326_v61  ;;  %v331_v7 = vsel %vm180_vm7, %v326_v61, %v328_v60  ;;  %v615_v8 = vrot.slane %v610_v5, %v614_v3  ;;  %v619_v10 = vrot.slane %v610_v5, %v618_v6  ;;  %949 = vset.pattern.permute.xlu1 %v1012_v56  ;;  %v682_v61 = vld [vmem:[%s1295_s2] sm:$0xff]  ;;  %s1013_s2 = smov [#allocation6]  }
  0xce   :  { %555 = vmatprep.subr.mxu0 %v331_v7  ;;  %v627_v47 = vrot.slane %v610_v5, %v626_v22  ;;  %v631_v31 = vrot.slane %v610_v5, %v630_v25  ;;  %v635_v33 = vrot.slane %v610_v5, %v634_v27  ;;  %s729_s20 = sshll.u32 %s1013_s2, 4  ;;  %s730_s20 = int_to_ptr.vmem [resolvable:$true] %s729_s20 }
  0xcf   :  { %556 = vmatpush1.msra.mxu0 %v330_v0  ;;  %s974_s3 = scalar_lea.vmem %s730_s20, 768  ;;  %p979_p9 = scmp.lt.s32.totalorder %s730_s20, %s730_s20 }
  0xd0   :  { %743 = vmatmul.mubr.msk.f32.vlgmr.msra.gmra.mrb[2].mxu0 %vm393_vm8, %v1215_v13  ;;  %v622_v13 = vsub.s32 2, %v613_v26  ;;  %p975_p8 = scmp.ne.s32.totalorder %s730_s20, %s974_s3  ;;  %p980_p10 = scmp.lt.s32.totalorder %s974_s3, %s974_s3 }
  0xd2   :  { %v623_v24 = vrot.slane %v610_v5, %v622_v13  ;;  %p981_p11 = por %p980_p10, %p979_p9 }
  0xd4   :  { %p982_p12 = pnand %p981_p11, %p975_p8 }
 0x187   :  { %v1265_v11 = vpop.f32.mrb[0].mxu0 }
 0x188   :  { %v642_v16 = vmul.f32 %v615_v8, %v1265_v11  ;;  %v1268_v18 = vpop.f32.mrb[1].mxu0 }
 0x189   :  { %v643_v12 = vmul.f32 %v619_v10, %v1268_v18 }
 0x18b   :  { %v648_v19 = vadd.f32 %v643_v12, %v642_v16 }
 0x19f   :  { %v534_v28 = vpop.f32.mrb[0].mxu1 }
 0x1a0   :  { %v644_v46 = vmul.f32 %v623_v24, %v534_v28  ;;  %v536_v21 = vpop.f32.mrb[1].mxu1 }
 0x1a1   :  { %v645_v32 = vmul.f32 %v627_v47, %v536_v21 }
 0x1a2   :  { %v649_v14 = vadd.f32 %v648_v19, %v644_v46 }
 0x1a3   :  { %v605_v15 = vpop.f32.mrb[2].mxu0 }
 0x1a4   :  { %v650_v38 = vadd.f32 %v649_v14, %v645_v32  ;;  %v646_v42 = vmul.f32 %v631_v31, %v605_v15  ;;  %v607_v34 = vpop.f32.mrb[3].mxu0 }
 0x1a5   :  { %v647_v37 = vmul.f32 %v635_v33, %v607_v34 }
 0x1a6   :  { %v651_v40 = vadd.f32 %v650_v38, %v646_v42 }
 0x1a8   :  { %v652_v35 = vadd.f32 %v651_v40, %v647_v37 }
 0x1aa   :  { %653 = vadd.xlane.f32.xlu0 %v652_v35 }
 0x237   :  { %v654_v36 = vpop.xlane.xlu0 %653 }
 0x238   :  { %v655_v39 = vmul.f32 0.001953125, %v654_v36 }
 0x23a   :  { %v656_v4 = vsub.f32 %v1265_v11, %v655_v39  ;;  %v657_v1 = vsub.f32 %v1268_v18, %v655_v39  ;;  %v658_v41 = vsub.f32 %v534_v28, %v655_v39  ;;  %v659_v43 = vsub.f32 %v536_v21, %v655_v39 }
 0x23b   :  { %v660_v44 = vsub.f32 %v605_v15, %v655_v39  ;;  %v661_v63 = vsub.f32 %v607_v34, %v655_v39 }
 0x23c   :  { %v662_v29 = vmul.f32 %v656_v4, %v615_v8  ;;  %v663_v30 = vmul.f32 %v657_v1, %v619_v10  ;;  %v664_v45 = vmul.f32 %v658_v41, %v623_v24  ;;  %v665_v48 = vmul.f32 %v659_v43, %v627_v47 }
 0x23d   :  { %v666_v50 = vmul.f32 %v660_v44, %v631_v31  ;;  %v667_v17 = vmul.f32 %v661_v63, %v635_v33 }
 0x23e   :  { %v668_v49 = vmul.f32 %v662_v29, %v662_v29  ;;  %v669_v62 = vmul.f32 %v663_v30, %v663_v30  ;;  %v670_v51 = vmul.f32 %v664_v45, %v664_v45  ;;  %v671_v54 = vmul.f32 %v665_v48, %v665_v48 }
 0x23f   :  { %v672_v20 = vmul.f32 %v666_v50, %v666_v50  ;;  %v673_v55 = vmul.f32 %v667_v17, %v667_v17 }
 0x240   :  { %v674_v52 = vadd.f32 %v669_v62, %v668_v49 }
 0x242   :  { %v675_v58 = vadd.f32 %v674_v52, %v670_v51 }
 0x244   :  { %v676_v23 = vadd.f32 %v675_v58, %v671_v54 }
 0x246   :  { %v677_v53 = vadd.f32 %v676_v23, %v672_v20 }
 0x248   :  { %v678_v57 = vadd.f32 %v677_v53, %v673_v55 }
 0x24a   :  { %679 = vadd.xlane.f32.xlu1 %v678_v57 }
 0x2d7   :  { %v680_v9 = vpop.xlane.xlu1 %679 }
 0x2d8   :  { %v681_v59 = vmul.f32 0.001953125, %v680_v9 }
 0x2da   :  { %v683_v60 = vadd.f32 1e-05, %v681_v59 }
 0x2dc   :  { %950 = vrsqrt.f32 %v683_v60 }
 0x2e6   :  { %v951_v0 = vpop.eup %950 }
 0x2e7   :  { %v685_v7 = vmul.f32 %v951_v0, %v682_v61 }
 0x2e9   :  { %691 = vperm.xlu0 %948, %v685_v7   ;;  %v687_v26 = vmul.f32 %v685_v7, %v655_v39 }
 0x2eb   :  { %v688_v3 = vsub.f32 %v686_v2, %v687_v26 }
 0x2ed   :  { %702 = vperm.xlu1 %949, %v688_v3  }
 0x368   :  { %v692_v5 = vpop.permute.xlu0 %691 }
 0x369   :  { %v694_v6 = vmul.f32 %v692_v5, %v1265_v11  ;;  %v695_v8 = vmul.f32 %v692_v5, %v1268_v18  ;;  %v696_v10 = vmul.f32 %v692_v5, %v534_v28  ;;  %v697_v16 = vmul.f32 %v692_v5, %v536_v21 }
 0x36a   :  { %v698_v12 = vmul.f32 %v692_v5, %v605_v15  ;;  %v699_v19 = vmul.f32 %v692_v5, %v607_v34 }
 0x36c   :  { %v703_v13 = vpop.permute.xlu1 %702 }
 0x36d   :  { %v705_v22 = vadd.f32 %v703_v13, %v694_v6  ;;  %v706_v24 = vadd.f32 %v703_v13, %v695_v8  ;;  %v707_v25 = vadd.f32 %v703_v13, %v696_v10  ;;  %v708_v47 = vadd.f32 %v703_v13, %v697_v16 }
 0x36e   :  { %v709_v27 = vadd.f32 %v703_v13, %v698_v12  ;;  %v710_v46 = vadd.f32 %v703_v13, %v699_v19 }
 0x36f   :  { %v711_v31 = vmax.f32 %v705_v22, 0.0  ;;  %v712_v32 = vmax.f32 %v706_v24, 0.0  ;;  %v713_v33 = vmax.f32 %v707_v25, 0.0  ;;  %v714_v14 = vmax.f32 %v708_v47, 0.0 }
 0x370   :  { %v715_v11 = vmax.f32 %v709_v27, 0.0  ;;  %v716_v18 = vmax.f32 %v710_v46, 0.0 }
 0x371   :  { %717 = vst [vmem:[#allocation6] sm:$0xff] %v711_v31  ;;  %718 = vst [vmem:[#allocation6 + $0x8] sm:$0xff] %v712_v32 }
 0x372   :  { %719 = vst [vmem:[#allocation6 + $0x10] sm:$0xff] %v713_v33  ;;  %721 = vst [vmem:[#allocation6 + $0x18] sm:$0xff] %v714_v14 }
 0x373   :  { %722 = vst [vmem:[#allocation6 + $0x20] sm:$0xff] %v715_v11  ;;  %723 = vst [vmem:[#allocation6 + $0x28] sm:$0xff] %v716_v18 }
 0x374   :  { %985 = shalt.err (!%p982_p12)
}
 0x375   :  { %s986_s23 = scalar_lea.hbm %s1298_s5, 768 }
 0x376   :  { %p987_p13 = scmp.ne.s32.totalorder %s1298_s5, %s986_s23  ;;  %p990_p0 = scmp.lt.u32.totalorder %s986_s23, %s1298_s5 }
 0x378   :  { %p992_p1 = pnand %p990_p0, %p987_p13 }
 0x37a   :  { %995 = shalt.err (!%p992_p1)
}
 0x37b   :  { %s1014_s28 = smov 384   ;;  %s1015_s29 = smov 24  }
 0x37c   :  { %735 = dma.vmem_to_hbm [thread:$0]  %s730_s20, 768, %s1298_s5, [#allocation5], %s1014_s28, %s1014_s28, %s1015_s29  }
 0x37d   :  { %998 = dma.done.wait [#allocation5], 768  }
 0x37e   :  { %999 = vsyncadd [#allocation5], 4294966528 }
 0x37f   :  { %739 = vsyncpa [#allocation4], 1 }
 0x380   :  { %740 = vsyncpa [#allocation5], 1 }

</bundles_post_ra>
